<compile_context>
chip_gen: v6e
topology: v6e:2x2x1
jax: 0.10.0
libtpu: 0.0.40
codegen_flags: <defaults>
</compile_context>

<pallas_src>
import functools

import jax
import jax.numpy as jnp
from jax.experimental import pallas as pl
from jax.experimental.pallas import tpu as pltpu


# Native sublane packing per element size (row tiles must be a multiple of this).
_SUBLANE_PACK = {1: 32, 2: 16, 4: 8}


def _vmem_capacity_bytes():
    try:
        cap = int(pltpu.get_tpu_info().vmem_capacity_bytes)
        if cap > 0:
            return cap
    except Exception:
        pass
    return 64 << 20  # conservative fallback (v7x-sized); safe on every generation


def _step_vmem_bytes(row_tile, d, itemsize):
    # Double-buffered input + output tiles, plus f32 working set:
    # 1 extra f32 tile when x is already f32, 2 for narrow dtypes (x_f32 + product).
    io = 2 * 2 * row_tile * d * itemsize
    work = (1 if itemsize == 4 else 2) * row_tile * d * 4
    return io + work


def _pick_row_tile(rows, d, itemsize, budget):
    sublane = _SUBLANE_PACK.get(itemsize, 8)
    tile = 1024
    while tile > sublane and _step_vmem_bytes(tile, d, itemsize) > budget:
        tile //= 2
    tile = max(tile, sublane)
    rows_aligned = pl.cdiv(rows, sublane) * sublane
    tile = min(tile, rows_aligned)
    # v7x has two TensorCores: give the "parallel" row axis >= 2 grid steps when
    # possible so both cores get work (near-free on single-TC v5e/v6e).
    while pl.cdiv(rows, tile) < 2 and tile >= 2 * sublane:
        half = (tile // 2) // sublane * sublane
        if half < sublane:
            break
        tile = half
    return tile


def _rmsnorm_kernel(x_ref, scale_ref, o_ref, *, d, eps, approx):
    # x_ref: (tm, d) row tile; scale_ref: (1, d) resident f32 scale.
    xf = x_ref[...].astype(jnp.float32)
    sumsq = jnp.sum(xf * xf, axis=-1, keepdims=True)           # (tm, 1) f32
    rms = jnp.sqrt(sumsq) * (float(d) ** -0.5)
    inv = pl.reciprocal(rms + eps, approx=approx)               # (tm, 1) f32
    o_ref[...] = (xf * inv * scale_ref[...]).astype(o_ref.dtype)


def _rmsnorm_folded_kernel(x_ref, scale_ref, seg_ref, segt_ref, o_ref, *, d, eps, approx):
    # k = 128//d original rows folded per kernel row; segments are contiguous runs
    # of d lanes.  seg_ref: (k*d, k) block-diagonal ones (f32), segt_ref: transpose.
    # Segmented reduce + broadcast-back use the (idle) MXU; weights are exact {0,1}.
    xf = x_ref[...].astype(jnp.float32)                         # (tm, k*d)
    sumsq = jnp.dot(xf * xf, seg_ref[...],
                    preferred_element_type=jnp.float32)         # (tm, k)
    rms = jnp.sqrt(sumsq) * (float(d) ** -0.5)
    inv = pl.reciprocal(rms + eps, approx=approx)               # (tm, k)
    inv_full = jnp.dot(inv, segt_ref[...],
                       preferred_element_type=jnp.float32)      # (tm, k*d)
    o_ref[...] = (xf * inv_full * scale_ref[...]).astype(o_ref.dtype)


def rmsnorm(x, scale, *, eps=1e-8, row_tile=None, approx_reciprocal=False):
    """RMSNorm over the last dim of x. x: [..., d], scale: [d]."""
    orig_shape = x.shape
    d = orig_shape[-1]
    itemsize = jnp.dtype(x.dtype).itemsize
    sublane = _SUBLANE_PACK.get(itemsize, 8)

    x2 = x.reshape(-1, d)                      # free, contiguous
    rows = x2.shape[0]

    # Lane-dense fold for small hidden dims: pack k rows into the 128-wide lane axis.
    fold = 1
    if d < 128 and 128 % d == 0 and (128 // d) > 1 and rows % (128 // d) == 0:
        fold = 128 // d
        x2 = x2.reshape(rows // fold, fold * d)  # still a free reshape
        rows = rows // fold
    d_k = x2.shape[1]                          # kernel-facing lane width

    # Generation-aware VMEM budget (128 MiB on v5e/v6e, 64 MiB on v7x).
    capacity = _vmem_capacity_bytes()
    vmem_limit = max(min(capacity - (16 << 20), 100 << 20), 32 << 20)
    budget = vmem_limit - (8 << 20)

    if row_tile is None:
        row_tile = _pick_row_tile(rows, d_k, itemsize, budget)
    assert row_tile % sublane == 0, "row_tile must respect dtype sublane packing"

    # Ragged tail: no jnp.pad — Pallas masks the partial edge block (OOB writes
    # dropped; OOB reads are garbage but only ever feed dropped rows).
    grid_rows = pl.cdiv(rows, row_tile)

    # Resident (1, d_k) f32 scale, pre-cast (and pre-tiled for the folded layout).
    scale_f = scale.astype(jnp.float32)
    if fold > 1:
        scale_f = jnp.tile(scale_f, fold)
    scale_f = scale_f.reshape(1, d_k)

    common = dict(d=d, eps=eps, approx=approx_reciprocal)

    def const_spec(shp):
        return pl.BlockSpec(shp, lambda i: (0, 0))

    if fold > 1:
        row_ids = jax.lax.broadcasted_iota(jnp.int32, (d_k, fold), 0) // d
        col_ids = jax.lax.broadcasted_iota(jnp.int32, (d_k, fold), 1)
        seg = (row_ids == col_ids).astype(jnp.float32)        # (k*d, k)
        segt = jnp.transpose(seg)                             # (k, k*d)
        kernel = functools.partial(_rmsnorm_folded_kernel, **common)
        in_arrays = (x2, scale_f, seg, segt)
        in_specs = [
            pl.BlockSpec((row_tile, d_k), lambda i: (i, 0)),
            const_spec((1, d_k)),
            const_spec((d_k, fold)),
            const_spec((fold, d_k)),
        ]
    else:
        kernel = functools.partial(_rmsnorm_kernel, **common)
        in_arrays = (x2, scale_f)
        in_specs = [
            pl.BlockSpec((row_tile, d_k), lambda i: (i, 0)),
            const_spec((1, d_k)),
        ]

    out = pl.pallas_call(
        kernel,
        out_shape=jax.ShapeDtypeStruct((rows, d_k), x.dtype),
        grid_spec=pltpu.PrefetchScalarGridSpec(
            num_scalar_prefetch=0,
            grid=(grid_rows,),
            in_specs=in_specs,
            out_specs=pl.BlockSpec((row_tile, d_k), lambda i: (i, 0)),
        ),
        compiler_params=pltpu.CompilerParams(
            dimension_semantics=("parallel",),
            vmem_limit_bytes=int(vmem_limit),
        ),
    )(*in_arrays)

    return out.reshape(orig_shape)


def rmsnorm_reference(x, scale, *, eps=1e-8):
    d = x.shape[-1]
    xf = x.astype(jnp.float32)
    norm_x = jnp.sqrt(jnp.sum(xf * xf, axis=-1, keepdims=True))
    rms_x = norm_x * (d ** -0.5)
    return (scale.astype(jnp.float32) * (xf / (rms_x + eps))).astype(x.dtype)


# TODO(synk): partial RMSNorm (0 <= p <= 1) and the bias=True offset branch are not
#             exercised by the module's default config; only the default path is here.

if __name__ == "__main__":
    key = jax.random.PRNGKey(0)
    k1, k2, k3, k4 = jax.random.split(key, 4)

    # Primary case matching the module: batch=2, seq=8, hidden=32 (folded, lane-dense path).
    batch, seq, d = 2, 8, 32
    x = jax.random.normal(k1, (batch, seq, d), dtype=jnp.float32)
    scale = jnp.ones((d,), dtype=jnp.float32)       # nn.Parameter(torch.ones(d))
    out = jax.block_until_ready(rmsnorm(x, scale, eps=1e-8))
    ref = rmsnorm_reference(x, scale, eps=1e-8)
    assert out.shape == x.shape
    # Tolerance leaves margin for a possibly lower-precision f32 MXU path on the
    # tiny block-diagonal matmuls; structural errors would be O(1).
    assert jnp.allclose(out, ref, atol=5e-3, rtol=5e-3), "fold path mismatch"

    # Ragged row count with d a multiple of 128 (non-folded path, partial edge block, no pad).
    x2 = jax.random.normal(k2, (3, 5, 128), dtype=jnp.float32)
    s2 = jax.random.normal(k3, (128,), dtype=jnp.float32)
    out2 = jax.block_until_ready(rmsnorm(x2, s2, eps=1e-8))
    ref2 = rmsnorm_reference(x2, s2, eps=1e-8)
    assert jnp.allclose(out2, ref2, atol=1e-4, rtol=1e-4), "ragged path mismatch"

    # bf16 inputs: all math in f32, single cast on store.
    x3 = jax.random.normal(k4, (2, 8, 256), dtype=jnp.float32).astype(jnp.bfloat16)
    s3 = jnp.ones((256,), dtype=jnp.float32)
    out3 = jax.block_until_ready(rmsnorm(x3, s3, eps=1e-8))
    ref3 = rmsnorm_reference(x3, s3, eps=1e-8)
    assert out3.dtype == jnp.bfloat16
    assert jnp.allclose(out3.astype(jnp.float32), ref3.astype(jnp.float32),
                        atol=5e-2, rtol=5e-2), "bf16 path mismatch"

    print("KERNEL_OK")
</pallas_src>

<mosaic_0001>
module attributes {stable_mosaic.version = 11 : i64} {
  func.func @_rmsnorm_folded_kernel(%arg0: i32, %arg1: memref<8x128xf32, #tpu.memory_space<vmem>>, %arg2: memref<1x128xf32, #tpu.memory_space<vmem>>, %arg3: memref<128x4xf32, #tpu.memory_space<vmem>>, %arg4: memref<4x128xf32, #tpu.memory_space<vmem>>, %arg5: memref<8x128xf32, #tpu.memory_space<vmem>>) attributes {dimension_semantics = [#tpu.dimension_semantics<parallel>], iteration_bounds = array<i64: 1>, scalar_prefetch = 0 : i64, scratch_operands = 0 : i64, tpu.core_type = #tpu.core_type<tc>, window_params = [{transform_indices = @transform_0, window_bounds = array<i64: 8, 128>}, {pipeline_mode = #tpu.pipeline_mode<synchronous>, transform_indices = @transform_1, window_bounds = array<i64: 1, 128>}, {pipeline_mode = #tpu.pipeline_mode<synchronous>, transform_indices = @transform_2, window_bounds = array<i64: 128, 4>}, {pipeline_mode = #tpu.pipeline_mode<synchronous>, transform_indices = @transform_3, window_bounds = array<i64: 4, 128>}, {transform_indices = @transform_4, window_bounds = array<i64: 8, 128>}]} {
    %c0 = arith.constant 0 : index
    %c0_0 = arith.constant 0 : index
    %0 = vector.load %arg1[%c0, %c0_0] : memref<8x128xf32, #tpu.memory_space<vmem>>, vector<8x128xf32>
    %1 = arith.mulf %0, %0 : vector<8x128xf32>
    %c0_1 = arith.constant 0 : index
    %c0_2 = arith.constant 0 : index
    %2 = vector.load %arg3[%c0_1, %c0_2] : memref<128x4xf32, #tpu.memory_space<vmem>>, vector<128x4xf32>
    %cst = arith.constant dense<0.000000e+00> : vector<8x4xf32>
    %3 = tpu.matmul %1, %2, %cst {dimension_numbers = #tpu.dot_dimension_numbers<[1], [0], [0], [1], [0, 0, 1, 1], [], []>} : vector<8x128xf32>, vector<128x4xf32>, vector<8x4xf32> -> vector<8x4xf32>
    %4 = math.sqrt %3 : vector<8x4xf32>
    %cst_3 = arith.constant 0.176776692 : f32
    %5 = vector.broadcast %cst_3 : f32 to vector<8x4xf32>
    %6 = arith.mulf %4, %5 : vector<8x4xf32>
    %cst_4 = arith.constant 9.99999993E-9 : f32
    %7 = vector.broadcast %cst_4 : f32 to vector<8x4xf32>
    %8 = arith.addf %6, %7 : vector<8x4xf32>
    %9 = tpu.reciprocal %8 : vector<8x4xf32> -> vector<8x4xf32>
    %c0_5 = arith.constant 0 : index
    %c0_6 = arith.constant 0 : index
    %10 = vector.load %arg4[%c0_5, %c0_6] : memref<4x128xf32, #tpu.memory_space<vmem>>, vector<4x128xf32>
    %cst_7 = arith.constant dense<0.000000e+00> : vector<8x128xf32>
    %11 = tpu.matmul %9, %10, %cst_7 {dimension_numbers = #tpu.dot_dimension_numbers<[1], [0], [0], [1], [0, 0, 1, 1], [], []>} : vector<8x4xf32>, vector<4x128xf32>, vector<8x128xf32> -> vector<8x128xf32>
    %12 = arith.mulf %0, %11 : vector<8x128xf32>
    %c0_8 = arith.constant 0 : index
    %c0_9 = arith.constant 0 : index
    %13 = vector.load %arg2[%c0_8, %c0_9] : memref<1x128xf32, #tpu.memory_space<vmem>>, vector<1x128xf32>
    %14 = vector.broadcast %13 : vector<1x128xf32> to vector<8x128xf32>
    %15 = arith.mulf %12, %14 : vector<8x128xf32>
    %c0_10 = arith.constant 0 : index
    %c0_11 = arith.constant 0 : index
    %16 = vector.load %arg5[%c0_10, %c0_11] : memref<8x128xf32, #tpu.memory_space<vmem>>, vector<8x128xf32>
    tpu.vector_store %arg5[%c0_10, %c0_11], %15 {strides = array<i32>} : memref<8x128xf32, #tpu.memory_space<vmem>>, vector<8x128xf32>,
    return
  }
  func.func @transform_0(%arg0: i32) -> (i32, i32) {
    %c0_i32 = arith.constant 0 : i32
    %c0_i32_0 = arith.constant 0 : i32
    return %arg0, %c0_i32 : i32, i32
  }
  func.func @transform_1(%arg0: i32) -> (i32, i32) {
    %c0_i32 = arith.constant 0 : i32
    %c0_i32_0 = arith.constant 0 : i32
    %c0_i32_1 = arith.constant 0 : i32
    return %c0_i32, %c0_i32_0 : i32, i32
  }
  func.func @transform_2(%arg0: i32) -> (i32, i32) {
    %c0_i32 = arith.constant 0 : i32
    %c0_i32_0 = arith.constant 0 : i32
    %c0_i32_1 = arith.constant 0 : i32
    return %c0_i32, %c0_i32_0 : i32, i32
  }
  func.func @transform_3(%arg0: i32) -> (i32, i32) {
    %c0_i32 = arith.constant 0 : i32
    %c0_i32_0 = arith.constant 0 : i32
    %c0_i32_1 = arith.constant 0 : i32
    return %c0_i32, %c0_i32_0 : i32, i32
  }
  func.func @transform_4(%arg0: i32) -> (i32, i32) {
    %c0_i32 = arith.constant 0 : i32
    %c0_i32_0 = arith.constant 0 : i32
    return %arg0, %c0_i32 : i32, i32
  }
}

</mosaic_0001>

<bundles_post_ra>
// kernel: tpu_custom_call.1
= control target key start
LH: loop header
LB: loop body
LE: loop exit
PB: predicated region body
PF: predicated region fallthrough
CT: control target
= control target key end

     0   :  { %9 = vsyncpa [#allocation3], 0  ;;  %v314_v1 = vmov 0.0   ;;  %vm315_vm0 = vmmov 0   ;;  %vm121_vm1 = vcmask 1043456   ;;  %vm117_vm4 = vcmask 31744   ;;  %s404_s0 = inlined_call_operand.vmem [shape: f32[4,128], index: 0, kind: input, shape index: {}]   ;;  %s405_s1 = inlined_call_operand.vmem [shape: f32[1,128], index: 1, kind: input, shape index: {}]   ;;  %s406_s2 = inlined_call_operand.vmem [shape: f32[128,4], index: 2, kind: input, shape index: {}]   ;;  %s407_s3 = inlined_call_operand.vmem [shape: f32[4,128], index: 3, kind: input, shape index: {}]   ;;  %s408_s4 = inlined_call_operand.hbm [shape: f32[4,128], index: 4, kind: output, shape index: {}]  }
   0x1   :  { %v35_v0 = vld [vmem:[%s406_s2 + $0x78] sm:$0xff]  ;;  %243 = vmatprep.subr.mxu0 %v314_v1  ;;  %v34_v2 = vld [vmem:[%s406_s2 + $0x70] sm:$0xff]  ;;  %275 = vmatprep.mubr.msk.f32.mxu0 %vm315_vm0, %v314_v1  ;;  %v33_v3 = vld [vmem:[%s406_s2 + $0x68] sm:$0xff] }
   0x2   :  { %244 = vmatpush3.msra.mxu0 %v35_v0  ;;  %278 = vmatprep.subr.mxu1 %v314_v1  ;;  %v32_v4 = vld [vmem:[%s406_s2 + $0x60] sm:$0xff]  ;;  %v31_v5 = vld [vmem:[%s406_s2 + $0x58] sm:$0xff]  ;;  %v30_v6 = vld [vmem:[%s406_s2 + $0x50] sm:$0xff] }
   0x3   :  { %245 = vmatprep.subr.mxu0 %v314_v1  ;;  %280 = vmatprep.mubr.msk.f32.mxu1 %vm315_vm0, %v314_v1  ;;  %v29_v7 = vld [vmem:[%s406_s2 + $0x48] sm:$0xff]  ;;  %v28_v8 = vld [vmem:[%s406_s2 + $0x40] sm:$0xff]  ;;  %v27_v9 = vld [vmem:[%s406_s2 + $0x38] sm:$0xff] }
   0x4   :  { %246 = vmatpush3.msra.mxu0 %v34_v2  ;;  %v26_v10 = vld [vmem:[%s406_s2 + $0x30] sm:$0xff]  ;;  %v25_v11 = vld [vmem:[%s406_s2 + $0x28] sm:$0xff]  ;;  %v24_v12 = vld [vmem:[%s406_s2 + $0x20] sm:$0xff] }
   0x5   :  { %247 = vmatprep.subr.mxu0 %v314_v1  ;;  %v23_v13 = vld [vmem:[%s406_s2 + $0x18] sm:$0xff]  ;;  %v22_v14 = vld [vmem:[%s406_s2 + $0x10] sm:$0xff]  ;;  %v18_v15 = vld [vmem:[%s404_s0] sm:$0xff] }
   0x6   :  { %248 = vmatpush3.msra.mxu0 %v33_v3  ;;  %v21_v16 = vld [vmem:[%s406_s2 + $0x8] sm:$0xff]  ;;  %v20_v17 = vld [vmem:[%s406_s2] sm:$0xff]  ;;  %v19_v18 = vmul.f32 %v18_v15, %v18_v15 }
   0x7   :  { %249 = vmatprep.subr.mxu0 %v314_v1  ;;  %v116_v19 = vld [vmem:[%s407_s3] sm:$0xf] }
   0x8   :  { %250 = vmatpush3.msra.mxu0 %v32_v4  ;;  %279 = vmatpush3.msk.msra.mxu1 %vm121_vm1, %v116_v19  ;;  %v223_v31 = vld [vmem:[%s405_s1] ss:$0 sm:$0xff] }
   0x9   :  { %251 = vmatprep.subr.mxu0 %v314_v1 }
   0xa   :  { %252 = vmatpush3.msra.mxu0 %v31_v5 }
   0xb   :  { %253 = vmatprep.subr.mxu0 %v314_v1 }
   0xc   :  { %254 = vmatpush3.msra.mxu0 %v30_v6 }
   0xd   :  { %255 = vmatprep.subr.mxu0 %v314_v1 }
   0xe   :  { %256 = vmatpush3.msra.mxu0 %v29_v7 }
   0xf   :  { %257 = vmatprep.subr.mxu0 %v314_v1 }
  0x10   :  { %258 = vmatpush3.msra.mxu0 %v28_v8 }
  0x11   :  { %259 = vmatprep.subr.mxu0 %v314_v1 }
  0x12   :  { %260 = vmatpush3.msra.mxu0 %v27_v9 }
  0x13   :  { %261 = vmatprep.subr.mxu0 %v314_v1 }
  0x14   :  { %262 = vmatpush3.msra.mxu0 %v26_v10 }
  0x15   :  { %263 = vmatprep.subr.mxu0 %v314_v1 }
  0x16   :  { %264 = vmatpush3.msra.mxu0 %v25_v11 }
  0x17   :  { %265 = vmatprep.subr.mxu0 %v314_v1 }
  0x18   :  { %266 = vmatpush3.msra.mxu0 %v24_v12 }
  0x19   :  { %267 = vmatprep.subr.mxu0 %v314_v1 }
  0x1a   :  { %268 = vmatpush3.msra.mxu0 %v23_v13 }
  0x1b   :  { %269 = vmatprep.subr.mxu0 %v314_v1 }
  0x1c   :  { %270 = vmatpush3.msra.mxu0 %v22_v14 }
  0x1d   :  { %271 = vmatprep.subr.mxu0 %v314_v1 }
  0x1e   :  { %272 = vmatpush3.msra.mxu0 %v21_v16 }
  0x1f   :  { %273 = vmatprep.subr.mxu0 %v314_v1 }
  0x20   :  { %274 = vmatpush3.msra.mxu0 %v20_v17 }
  0x21   :  { %276 = vmatmul.mubr.f32.vlgmr.msra.gmra.mxu0 %v19_v18 }
  0xe1   :  { %v102_v20 = vpop.f32.mrf.mxu0 }
  0xe2   :  { %288 = vrsqrt.f32 %v102_v20  ;;  %vm108_vm2 = vcmp.eq.f32.partialorder %v102_v20, inf  ;;  %v111_v24 = vand.u32 2147483648, %v102_v20  ;;  %vm110_vm3 = vcmp.eq.f32.partialorder %v102_v20, 0.0 }
  0xe3   :  { %v277_v21 = vpop.f32.mrf.mxu0 }
  0xef   :  { %v289_v22 = vpop.eup %288 }
  0xf0   :  { %v107_v23 = vmul.f32 %v289_v22, %v102_v20 }
  0xf2   :  { %v109_v25 = vsel %vm108_vm2, %v102_v20, %v107_v23 }
  0xf3   :  { %v112_v26 = vsel %vm110_vm3, %v111_v24, %v109_v25 }
  0xf4   :  { %v113_v27 = vmul.f32 0.17677669, %v112_v26 }
  0xf6   :  { %v114_v28 = vadd.f32 1e-08, %v113_v27 }
  0xf8   :  { %290 = vrcp.f32 %v114_v28 }
 0x105   :  { %v291_v29 = vpop.eup %290 }
 0x106   :  { %281 = vmatmul.mubr.msk.f32.vlgmr.msra.gmra.mxu1 %vm117_vm4, %v291_v29 }
 0x1c6   :  { %v191_v30 = vpop.f32.mrf.mxu1 }
 0x1c7   :  { %v195_v32 = vmul.f32 %v191_v30, %v18_v15 }
 0x1c8   :  { %v282_v33 = vpop.f32.mrf.mxu1 }
 0x1c9   :  { %v203_v34 = vmul.f32 %v223_v31, %v195_v32 }
 0x1cb   :  { %204 = vst [vmem:[#allocation2] sm:$0xff] %v203_v34 }
 0x1cc   :  { %209 = vsyncadd [#allocation3], 64  ;;  %s316_s3 = smov [#allocation2]  }
 0x1cd   :  { %s210_s25 = sshll.u32 %s316_s3, 4  ;;  %s211_s25 = int_to_ptr.vmem [resolvable:$true] %s210_s25 }
 0x1ce   :  { %s292_s26 = scalar_lea.vmem %s211_s25, 64  ;;  %s296_s27 = scalar_lea.vmem %s211_s25, 128 }
 0x1cf   :  { %p293_p0 = scmp.ne.s32.totalorder %s211_s25, %s292_s26  ;;  %p297_p1 = scmp.lt.s32.totalorder %s211_s25, %s211_s25 }
 0x1d0   :  { %p298_p2 = scmp.lt.s32.totalorder %s296_s27, %s292_s26 }
 0x1d2   :  { %p299_p3 = por %p298_p2, %p297_p1 }
 0x1d4   :  { %p300_p4 = pnand %p299_p3, %p293_p0 }
 0x1d6   :  { %303 = shalt.err (!%p300_p4)
}
 0x1d7   :  { %s317_s28 = smov 64   ;;  %s318_s29 = smov 4  }
 0x1d8   :  { %216 = dma.vmem_to_hbm [thread:$0]  %s211_s25, 64, %s408_s4, [#allocation3], %s317_s28, %s317_s28, %s318_s29  }
 0x1d9   :  { %312 = dma.done.wait [#allocation3], 128  }
 0x1da   :  { %313 = vsyncadd [#allocation3], 4294967168 }
 0x1db   :  { %220 = vsyncpa [#allocation3], 1 }

</bundles_post_ra>
